<compile_context>
chip_gen: v5e
topology: v5e:2x2
jax: 0.10.0
libtpu: 0.0.40
codegen_flags: <defaults>
</compile_context>

<pallas_src>
import functools

import jax
import jax.numpy as jnp
from jax import lax
from jax.experimental import pallas as pl
from jax.experimental.pallas import tpu as pltpu

_EPS = 1e-6    # torch.nn.PairwiseDistance default eps (dist = ||x1 - x2 + eps||_2)
_TINY = 1e-30  # one-time positivity floor for K (degenerate / underflow inputs)


def _wasserstein_kernel(reg_ref, x_ref, y_ref, out_ref, *,
                        num_iters, unroll, use_mxu):
    """Fused pairwise-L2 cost + Sinkhorn OT distance.

    reg_ref : (1,)    SMEM  entropy regularization
    x_ref   : (N1,D)  VMEM  sample1
    y_ref   : (N2,D)  VMEM  sample2
    out_ref : (1,1)   VMEM  scalar Sinkhorn distance sum(T * C_norm)
    """
    x = x_ref[...].astype(jnp.float32)
    y = y_ref[...].astype(jnp.float32)
    n1, d = x.shape
    n2 = y.shape[0]

    # ---- pairwise L2 cost via MXU gram expansion (no (N1,N2,D) temp) -------
    # ||x_i - y_j + eps||^2 = (||x_i||^2 + 2 eps sum(x_i))
    #                       + (||y_j||^2 - 2 eps sum(y_j))
    #                       - 2 x_i . y_j + D eps^2
    row_terms = jnp.sum(x * x + (2.0 * _EPS) * x, axis=1, keepdims=True)     # (N1,1)
    # y-side terms as a lane-dense (1, N2) row via a ones-matvec (avoids an
    # XLU transpose of an (N2, 1) column).
    col_terms = lax.dot_general(
        jnp.ones((1, d), jnp.float32), y * y - (2.0 * _EPS) * y,
        dimension_numbers=(((1,), (1,)), ((), ())),
        preferred_element_type=jnp.float32)                                   # (1,N2)
    xy = lax.dot_general(
        x, y, dimension_numbers=(((1,), (1,)), ((), ())),
        preferred_element_type=jnp.float32)                                   # (N1,N2)
    c2 = row_terms + col_terms - 2.0 * xy + d * (_EPS * _EPS)
    C = jnp.sqrt(jnp.maximum(c2, 0.0))                                        # (N1,N2)

    # ---- normalize_cost=True is forced by WassersteinLossL1.__init__ -------
    max_c = jnp.maximum(jnp.max(C), _TINY)
    inv_max = 1.0 / max_c
    reg = reg_ref[0]
    # K = exp(-(C/maxC)/reg): fold both scalars into one full-matrix multiply.
    K = jnp.exp(C * (-(inv_max / reg)))                                       # (N1,N2)
    # One-time positivity floor so the 2*num_iters-long serial Sinkhorn chain
    # carries no per-iteration max/clamp guards.
    K = jnp.maximum(K, _TINY)

    a = 1.0 / n1                                       # uniform source marginal
    b = 1.0 / n2                                       # uniform target marginal
    u0 = jnp.full((n1, 1), a, jnp.float32)
    v0 = jnp.full((1, n2), b, jnp.float32)

    def ktu_fn(u):                                     # K^T u -> (1, N2)
        if use_mxu:
            return lax.dot_general(u, K, dimension_numbers=(((0,), (0,)), ((), ())),
                                   preferred_element_type=jnp.float32)
        return jnp.sum(K * u, axis=0, keepdims=True)

    def kv_fn(v):                                      # K v   -> (N1, 1)
        if use_mxu:
            return lax.dot_general(K, v, dimension_numbers=(((1,), (1,)), ((), ())),
                                   preferred_element_type=jnp.float32)
        return jnp.sum(K * v, axis=1, keepdims=True)

    def one_update(u, v, exact):
        ktu = ktu_fn(u)
        v = (b / ktu) if exact else b * pl.reciprocal(ktu, approx=True)
        kv = kv_fn(v)
        u = (a / kv) if exact else a * pl.reciprocal(kv, approx=True)
        return u, v

    # TODO(synk): ot.gpu.sinkhorn uses a marginal-error stopping criterion
    # (1e-9, numItermax=1000); here we run a fixed iteration count (a
    # while_loop with a periodic convergence check would match it exactly).
    n_approx = max(num_iters - 1, 0)
    n_outer, rem = divmod(n_approx, unroll)

    def body(_, uv):
        u, v = uv
        for _ in range(unroll):                        # manual partial unroll
            u, v = one_update(u, v, exact=False)
        return u, v

    u, v = lax.fori_loop(0, n_outer, body, (u0, v0))
    for _ in range(rem):
        u, v = one_update(u, v, exact=False)
    if num_iters > 0:
        # Final iteration with exact divides so approx-reciprocal drift does
        # not leak into the returned distance.
        u, v = one_update(u, v, exact=True)

    # distance = sum(T * C/maxC) = inv_max * u^T (K .* C) v
    kc = K * C
    if use_mxu:
        row = lax.dot_general(kc, v, dimension_numbers=(((1,), (1,)), ((), ())),
                              preferred_element_type=jnp.float32)             # (N1,1)
    else:
        row = jnp.sum(kc * v, axis=1, keepdims=True)                          # (N1,1)
    out_ref[...] = inv_max * jnp.sum(u * row, axis=0, keepdims=True)


def wasserstein_loss_l1(sample1, sample2, entropy_reg, *, num_iters=200, unroll=8):
    """Forward pass of WassersteinLossL1: scalar Wasserstein-1 (Sinkhorn) distance."""
    n1, d = sample1.shape
    n2, d2 = sample2.shape
    assert d == d2
    use_mxu = max(n1, n2) >= 128   # MXU matvecs for the Sinkhorn chain at scale

    # TODO(synk): for large N1/N2, stream (N, Dk) tiles of x/y over a D grid
    # axis while accumulating C^2 in VMEM scratch, keep only K resident (bf16
    # at scale), split N1 rows across both v7x TensorCores, and set
    # vmem_limit_bytes per generation; at these sizes one VMEM block suffices.
    # TODO(synk): multi-loss workloads should lane-batch independent
    # (sample1, sample2) pairs so the serial Sinkhorn chain is amortized.
    reg = jnp.asarray(entropy_reg, jnp.float32).reshape((1,))
    dist = pl.pallas_call(
        functools.partial(_wasserstein_kernel, num_iters=num_iters,
                          unroll=unroll, use_mxu=use_mxu),
        out_shape=jax.ShapeDtypeStruct((1, 1), jnp.float32),
        grid=(1,),
        in_specs=[
            pl.BlockSpec(memory_space=pltpu.MemorySpace.SMEM),  # entropy_reg scalar
            pl.BlockSpec((n1, d), lambda i: (0, 0)),
            pl.BlockSpec((n2, d), lambda i: (0, 0)),
        ],
        out_specs=pl.BlockSpec((1, 1), lambda i: (0, 0)),
        compiler_params=pltpu.CompilerParams(dimension_semantics=("arbitrary",)),
    )(reg, sample1.astype(jnp.float32), sample2.astype(jnp.float32))
    return dist[0, 0]


if __name__ == "__main__":
    key = jax.random.PRNGKey(0)
    k1, k2 = jax.random.split(key)

    # Two batches of empirical samples (n_samples, feature_dim).
    n1, n2, d = 8, 8, 32
    sample1 = jax.random.normal(k1, (n1, d), dtype=jnp.float32)
    sample2 = jax.random.normal(k2, (n2, d), dtype=jnp.float32) + 0.5

    entropy_reg = 0.1  # corresponds to torch.Tensor([0.1]) passed to __init__

    dist = wasserstein_loss_l1(sample1, sample2, entropy_reg)
    jax.block_until_ready(dist)
    print("KERNEL_OK")
</pallas_src>

<mosaic_0001>
module attributes {stable_mosaic.version = 11 : i64} {
  func.func @_wasserstein_kernel(%arg0: i32, %arg1: memref<1xf32, #tpu.memory_space<smem>>, %arg2: memref<8x32xf32, #tpu.memory_space<vmem>>, %arg3: memref<8x32xf32, #tpu.memory_space<vmem>>, %arg4: memref<1x1xf32, #tpu.memory_space<vmem>>) attributes {dimension_semantics = [#tpu.dimension_semantics<arbitrary>], iteration_bounds = array<i64: 1>, scalar_prefetch = 0 : i64, scratch_operands = 0 : i64, tpu.core_type = #tpu.core_type<tc>, window_params = [{transform_indices = @transform_0, window_bounds = array<i64: 1>}, {pipeline_mode = #tpu.pipeline_mode<synchronous>, transform_indices = @transform_1, window_bounds = array<i64: 8, 32>}, {pipeline_mode = #tpu.pipeline_mode<synchronous>, transform_indices = @transform_2, window_bounds = array<i64: 8, 32>}, {pipeline_mode = #tpu.pipeline_mode<synchronous>, transform_indices = @transform_3, window_bounds = array<i64: 1, 1>}]} {
    %c0 = arith.constant 0 : index
    %c0_0 = arith.constant 0 : index
    %0 = vector.load %arg2[%c0, %c0_0] : memref<8x32xf32, #tpu.memory_space<vmem>>, vector<8x32xf32>
    %c0_1 = arith.constant 0 : index
    %c0_2 = arith.constant 0 : index
    %1 = vector.load %arg3[%c0_1, %c0_2] : memref<8x32xf32, #tpu.memory_space<vmem>>, vector<8x32xf32>
    %2 = arith.mulf %0, %0 : vector<8x32xf32>
    %cst = arith.constant 2.000000e-06 : f32
    %3 = vector.broadcast %cst : f32 to vector<8x32xf32>
    %4 = arith.mulf %3, %0 : vector<8x32xf32>
    %5 = arith.addf %2, %4 : vector<8x32xf32>
    %cst_3 = arith.constant dense<0.000000e+00> : vector<8xf32>
    %6 = vector.multi_reduction <add>, %5, %cst_3 [1] : vector<8x32xf32> to vector<8xf32>
    %7 = vector.shape_cast %6 : vector<8xf32> to vector<8x1xf32>
    %cst_4 = arith.constant 1.000000e+00 : f32
    %8 = vector.broadcast %cst_4 : f32 to vector<1x32xf32>
    %9 = arith.mulf %1, %1 : vector<8x32xf32>
    %cst_5 = arith.constant 2.000000e-06 : f32
    %10 = vector.broadcast %cst_5 : f32 to vector<8x32xf32>
    %11 = arith.mulf %10, %1 : vector<8x32xf32>
    %12 = arith.subf %9, %11 : vector<8x32xf32>
    %cst_6 = arith.constant dense<0.000000e+00> : vector<1x8xf32>
    %13 = tpu.matmul %8, %12, %cst_6 {dimension_numbers = #tpu.dot_dimension_numbers<[1], [1], [0], [0], [0, 0, 1, 0], [], []>} : vector<1x32xf32>, vector<8x32xf32>, vector<1x8xf32> -> vector<1x8xf32>
    %cst_7 = arith.constant dense<0.000000e+00> : vector<8x8xf32>
    %14 = tpu.matmul %0, %1, %cst_7 {dimension_numbers = #tpu.dot_dimension_numbers<[1], [1], [0], [0], [0, 0, 1, 0], [], []>} : vector<8x32xf32>, vector<8x32xf32>, vector<8x8xf32> -> vector<8x8xf32>
    %15 = vector.broadcast %7 : vector<8x1xf32> to vector<8x8xf32>
    %16 = vector.broadcast %13 : vector<1x8xf32> to vector<8x8xf32>
    %17 = arith.addf %15, %16 : vector<8x8xf32>
    %cst_8 = arith.constant 2.000000e+00 : f32
    %18 = vector.broadcast %cst_8 : f32 to vector<8x8xf32>
    %19 = arith.mulf %18, %14 : vector<8x8xf32>
    %20 = arith.subf %17, %19 : vector<8x8xf32>
    %cst_9 = arith.constant 3.200000e-11 : f32
    %21 = vector.broadcast %cst_9 : f32 to vector<8x8xf32>
    %22 = arith.addf %20, %21 : vector<8x8xf32>
    %cst_10 = arith.constant 0.000000e+00 : f32
    %23 = vector.broadcast %cst_10 : f32 to vector<8x8xf32>
    %24 = arith.maximumf %22, %23 : vector<8x8xf32>
    %25 = math.sqrt %24 : vector<8x8xf32>
    %26 = vector.shape_cast %25 : vector<8x8xf32> to vector<1x8x8xf32>
    %cst_11 = arith.constant dense<0xFF800000> : vector<1xf32>
    %27 = vector.multi_reduction <maximumf>, %26, %cst_11 [1, 2] : vector<1x8x8xf32> to vector<1xf32>
    %28 = vector.shape_cast %27 : vector<1xf32> to vector<1x1x1xf32>
    %29 = vector.extract %28[0, 0, 0] : f32 from vector<1x1x1xf32>
    %cst_12 = arith.constant 1.000000e-30 : f32
    %30 = arith.maximumf %29, %cst_12 : f32
    %cst_13 = arith.constant 1.000000e+00 : f32
    %31 = arith.divf %cst_13, %30 : f32
    %c0_14 = arith.constant 0 : index
    %32 = memref.load %arg1[%c0_14] : memref<1xf32, #tpu.memory_space<smem>>
    %33 = arith.divf %31, %32 : f32
    %cst_15 = arith.constant 0.000000e+00 : f32
    %34 = arith.subf %cst_15, %33 : f32
    %35 = vector.broadcast %34 : f32 to vector<8x8xf32>
    %36 = arith.mulf %25, %35 : vector<8x8xf32>
    %37 = math.exp %36 : vector<8x8xf32>
    %cst_16 = arith.constant 1.000000e-30 : f32
    %38 = vector.broadcast %cst_16 : f32 to vector<8x8xf32>
    %39 = arith.maximumf %37, %38 : vector<8x8xf32>
    %cst_17 = arith.constant 1.250000e-01 : f32
    %40 = vector.broadcast %cst_17 : f32 to vector<8x1xf32>
    %c0_i32 = arith.constant 0 : i32
    %c24_i32 = arith.constant 24 : i32
    %41 = arith.addi %c0_i32, %c24_i32 : i32
    %c1_i32 = arith.constant 1 : i32
    %42 = scf.for %arg5 = %c0_i32 to %41 step %c1_i32 iter_args(%arg6 = %40) -> (vector<8x1xf32>)  : i32 {
      %164 = vector.broadcast %arg6 : vector<8x1xf32> to vector<8x8xf32>
      %165 = arith.mulf %39, %164 : vector<8x8xf32>
      %cst_54 = arith.constant dense<0.000000e+00> : vector<8xf32>
      %166 = vector.multi_reduction <add>, %165, %cst_54 [0] : vector<8x8xf32> to vector<8xf32>
      %167 = vector.shape_cast %166 : vector<8xf32> to vector<1x8xf32>
      %168 = tpu.reciprocal %167 {approx = true} : vector<1x8xf32> -> vector<1x8xf32>
      %cst_55 = arith.constant 1.250000e-01 : f32
      %169 = vector.broadcast %cst_55 : f32 to vector<1x8xf32>
      %170 = arith.mulf %169, %168 : vector<1x8xf32>
      %171 = vector.broadcast %170 : vector<1x8xf32> to vector<8x8xf32>
      %172 = arith.mulf %39, %171 : vector<8x8xf32>
      %cst_56 = arith.constant dense<0.000000e+00> : vector<8xf32>
      %173 = vector.multi_reduction <add>, %172, %cst_56 [1] : vector<8x8xf32> to vector<8xf32>
      %174 = vector.shape_cast %173 : vector<8xf32> to vector<8x1xf32>
      %175 = tpu.reciprocal %174 {approx = true} : vector<8x1xf32> -> vector<8x1xf32>
      %cst_57 = arith.constant 1.250000e-01 : f32
      %176 = vector.broadcast %cst_57 : f32 to vector<8x1xf32>
      %177 = arith.mulf %176, %175 : vector<8x1xf32>
      %178 = vector.broadcast %177 : vector<8x1xf32> to vector<8x8xf32>
      %179 = arith.mulf %39, %178 : vector<8x8xf32>
      %cst_58 = arith.constant dense<0.000000e+00> : vector<8xf32>
      %180 = vector.multi_reduction <add>, %179, %cst_58 [0] : vector<8x8xf32> to vector<8xf32>
      %181 = vector.shape_cast %180 : vector<8xf32> to vector<1x8xf32>
      %182 = tpu.reciprocal %181 {approx = true} : vector<1x8xf32> -> vector<1x8xf32>
      %cst_59 = arith.constant 1.250000e-01 : f32
      %183 = vector.broadcast %cst_59 : f32 to vector<1x8xf32>
      %184 = arith.mulf %183, %182 : vector<1x8xf32>
      %185 = vector.broadcast %184 : vector<1x8xf32> to vector<8x8xf32>
      %186 = arith.mulf %39, %185 : vector<8x8xf32>
      %cst_60 = arith.constant dense<0.000000e+00> : vector<8xf32>
      %187 = vector.multi_reduction <add>, %186, %cst_60 [1] : vector<8x8xf32> to vector<8xf32>
      %188 = vector.shape_cast %187 : vector<8xf32> to vector<8x1xf32>
      %189 = tpu.reciprocal %188 {approx = true} : vector<8x1xf32> -> vector<8x1xf32>
      %cst_61 = arith.constant 1.250000e-01 : f32
      %190 = vector.broadcast %cst_61 : f32 to vector<8x1xf32>
      %191 = arith.mulf %190, %189 : vector<8x1xf32>
      %192 = vector.broadcast %191 : vector<8x1xf32> to vector<8x8xf32>
      %193 = arith.mulf %39, %192 : vector<8x8xf32>
      %cst_62 = arith.constant dense<0.000000e+00> : vector<8xf32>
      %194 = vector.multi_reduction <add>, %193, %cst_62 [0] : vector<8x8xf32> to vector<8xf32>
      %195 = vector.shape_cast %194 : vector<8xf32> to vector<1x8xf32>
      %196 = tpu.reciprocal %195 {approx = true} : vector<1x8xf32> -> vector<1x8xf32>
      %cst_63 = arith.constant 1.250000e-01 : f32
      %197 = vector.broadcast %cst_63 : f32 to vector<1x8xf32>
      %198 = arith.mulf %197, %196 : vector<1x8xf32>
      %199 = vector.broadcast %198 : vector<1x8xf32> to vector<8x8xf32>
      %200 = arith.mulf %39, %199 : vector<8x8xf32>
      %cst_64 = arith.constant dense<0.000000e+00> : vector<8xf32>
      %201 = vector.multi_reduction <add>, %200, %cst_64 [1] : vector<8x8xf32> to vector<8xf32>
      %202 = vector.shape_cast %201 : vector<8xf32> to vector<8x1xf32>
      %203 = tpu.reciprocal %202 {approx = true} : vector<8x1xf32> -> vector<8x1xf32>
      %cst_65 = arith.constant 1.250000e-01 : f32
      %204 = vector.broadcast %cst_65 : f32 to vector<8x1xf32>
      %205 = arith.mulf %204, %203 : vector<8x1xf32>
      %206 = vector.broadcast %205 : vector<8x1xf32> to vector<8x8xf32>
      %207 = arith.mulf %39, %206 : vector<8x8xf32>
      %cst_66 = arith.constant dense<0.000000e+00> : vector<8xf32>
      %208 = vector.multi_reduction <add>, %207, %cst_66 [0] : vector<8x8xf32> to vector<8xf32>
      %209 = vector.shape_cast %208 : vector<8xf32> to vector<1x8xf32>
      %210 = tpu.reciprocal %209 {approx = true} : vector<1x8xf32> -> vector<1x8xf32>
      %cst_67 = arith.constant 1.250000e-01 : f32
      %211 = vector.broadcast %cst_67 : f32 to vector<1x8xf32>
      %212 = arith.mulf %211, %210 : vector<1x8xf32>
      %213 = vector.broadcast %212 : vector<1x8xf32> to vector<8x8xf32>
      %214 = arith.mulf %39, %213 : vector<8x8xf32>
      %cst_68 = arith.constant dense<0.000000e+00> : vector<8xf32>
      %215 = vector.multi_reduction <add>, %214, %cst_68 [1] : vector<8x8xf32> to vector<8xf32>
      %216 = vector.shape_cast %215 : vector<8xf32> to vector<8x1xf32>
      %217 = tpu.reciprocal %216 {approx = true} : vector<8x1xf32> -> vector<8x1xf32>
      %cst_69 = arith.constant 1.250000e-01 : f32
      %218 = vector.broadcast %cst_69 : f32 to vector<8x1xf32>
      %219 = arith.mulf %218, %217 : vector<8x1xf32>
      %220 = vector.broadcast %219 : vector<8x1xf32> to vector<8x8xf32>
      %221 = arith.mulf %39, %220 : vector<8x8xf32>
      %cst_70 = arith.constant dense<0.000000e+00> : vector<8xf32>
      %222 = vector.multi_reduction <add>, %221, %cst_70 [0] : vector<8x8xf32> to vector<8xf32>
      %223 = vector.shape_cast %222 : vector<8xf32> to vector<1x8xf32>
      %224 = tpu.reciprocal %223 {approx = true} : vector<1x8xf32> -> vector<1x8xf32>
      %cst_71 = arith.constant 1.250000e-01 : f32
      %225 = vector.broadcast %cst_71 : f32 to vector<1x8xf32>
      %226 = arith.mulf %225, %224 : vector<1x8xf32>
      %227 = vector.broadcast %226 : vector<1x8xf32> to vector<8x8xf32>
      %228 = arith.mulf %39, %227 : vector<8x8xf32>
      %cst_72 = arith.constant dense<0.000000e+00> : vector<8xf32>
      %229 = vector.multi_reduction <add>, %228, %cst_72 [1] : vector<8x8xf32> to vector<8xf32>
      %230 = vector.shape_cast %229 : vector<8xf32> to vector<8x1xf32>
      %231 = tpu.reciprocal %230 {approx = true} : vector<8x1xf32> -> vector<8x1xf32>
      %cst_73 = arith.constant 1.250000e-01 : f32
      %232 = vector.broadcast %cst_73 : f32 to vector<8x1xf32>
      %233 = arith.mulf %232, %231 : vector<8x1xf32>
      %234 = vector.broadcast %233 : vector<8x1xf32> to vector<8x8xf32>
      %235 = arith.mulf %39, %234 : vector<8x8xf32>
      %cst_74 = arith.constant dense<0.000000e+00> : vector<8xf32>
      %236 = vector.multi_reduction <add>, %235, %cst_74 [0] : vector<8x8xf32> to vector<8xf32>
      %237 = vector.shape_cast %236 : vector<8xf32> to vector<1x8xf32>
      %238 = tpu.reciprocal %237 {approx = true} : vector<1x8xf32> -> vector<1x8xf32>
      %cst_75 = arith.constant 1.250000e-01 : f32
      %239 = vector.broadcast %cst_75 : f32 to vector<1x8xf32>
      %240 = arith.mulf %239, %238 : vector<1x8xf32>
      %241 = vector.broadcast %240 : vector<1x8xf32> to vector<8x8xf32>
      %242 = arith.mulf %39, %241 : vector<8x8xf32>
      %cst_76 = arith.constant dense<0.000000e+00> : vector<8xf32>
      %243 = vector.multi_reduction <add>, %242, %cst_76 [1] : vector<8x8xf32> to vector<8xf32>
      %244 = vector.shape_cast %243 : vector<8xf32> to vector<8x1xf32>
      %245 = tpu.reciprocal %244 {approx = true} : vector<8x1xf32> -> vector<8x1xf32>
      %cst_77 = arith.constant 1.250000e-01 : f32
      %246 = vector.broadcast %cst_77 : f32 to vector<8x1xf32>
      %247 = arith.mulf %246, %245 : vector<8x1xf32>
      %248 = vector.broadcast %247 : vector<8x1xf32> to vector<8x8xf32>
      %249 = arith.mulf %39, %248 : vector<8x8xf32>
      %cst_78 = arith.constant dense<0.000000e+00> : vector<8xf32>
      %250 = vector.multi_reduction <add>, %249, %cst_78 [0] : vector<8x8xf32> to vector<8xf32>
      %251 = vector.shape_cast %250 : vector<8xf32> to vector<1x8xf32>
      %252 = tpu.reciprocal %251 {approx = true} : vector<1x8xf32> -> vector<1x8xf32>
      %cst_79 = arith.constant 1.250000e-01 : f32
      %253 = vector.broadcast %cst_79 : f32 to vector<1x8xf32>
      %254 = arith.mulf %253, %252 : vector<1x8xf32>
      %255 = vector.broadcast %254 : vector<1x8xf32> to vector<8x8xf32>
      %256 = arith.mulf %39, %255 : vector<8x8xf32>
      %cst_80 = arith.constant dense<0.000000e+00> : vector<8xf32>
      %257 = vector.multi_reduction <add>, %256, %cst_80 [1] : vector<8x8xf32> to vector<8xf32>
      %258 = vector.shape_cast %257 : vector<8xf32> to vector<8x1xf32>
      %259 = tpu.reciprocal %258 {approx = true} : vector<8x1xf32> -> vector<8x1xf32>
      %cst_81 = arith.constant 1.250000e-01 : f32
      %260 = vector.broadcast %cst_81 : f32 to vector<8x1xf32>
      %261 = arith.mulf %260, %259 : vector<8x1xf32>
      %262 = vector.broadcast %261 : vector<8x1xf32> to vector<8x8xf32>
      %263 = arith.mulf %39, %262 : vector<8x8xf32>
      %cst_82 = arith.constant dense<0.000000e+00> : vector<8xf32>
      %264 = vector.multi_reduction <add>, %263, %cst_82 [0] : vector<8x8xf32> to vector<8xf32>
      %265 = vector.shape_cast %264 : vector<8xf32> to vector<1x8xf32>
      %266 = tpu.reciprocal %265 {approx = true} : vector<1x8xf32> -> vector<1x8xf32>
      %cst_83 = arith.constant 1.250000e-01 : f32
      %267 = vector.broadcast %cst_83 : f32 to vector<1x8xf32>
      %268 = arith.mulf %267, %266 : vector<1x8xf32>
      %269 = vector.broadcast %268 : vector<1x8xf32> to vector<8x8xf32>
      %270 = arith.mulf %39, %269 : vector<8x8xf32>
      %cst_84 = arith.constant dense<0.000000e+00> : vector<8xf32>
      %271 = vector.multi_reduction <add>, %270, %cst_84 [1] : vector<8x8xf32> to vector<8xf32>
      %272 = vector.shape_cast %271 : vector<8xf32> to vector<8x1xf32>
      %273 = tpu.reciprocal %272 {approx = true} : vector<8x1xf32> -> vector<8x1xf32>
      %cst_85 = arith.constant 1.250000e-01 : f32
      %274 = vector.broadcast %cst_85 : f32 to vector<8x1xf32>
      %275 = arith.mulf %274, %273 : vector<8x1xf32>
      scf.yield %275 : vector<8x1xf32>
    }
    %43 = vector.broadcast %42 : vector<8x1xf32> to vector<8x8xf32>
    %44 = arith.mulf %39, %43 : vector<8x8xf32>
    %cst_18 = arith.constant dense<0.000000e+00> : vector<8xf32>
    %45 = vector.multi_reduction <add>, %44, %cst_18 [0] : vector<8x8xf32> to vector<8xf32>
    %46 = vector.shape_cast %45 : vector<8xf32> to vector<1x8xf32>
    %47 = tpu.reciprocal %46 {approx = true} : vector<1x8xf32> -> vector<1x8xf32>
    %cst_19 = arith.constant 1.250000e-01 : f32
    %48 = vector.broadcast %cst_19 : f32 to vector<1x8xf32>
    %49 = arith.mulf %48, %47 : vector<1x8xf32>
    %50 = vector.broadcast %49 : vector<1x8xf32> to vector<8x8xf32>
    %51 = arith.mulf %39, %50 : vector<8x8xf32>
    %cst_20 = arith.constant dense<0.000000e+00> : vector<8xf32>
    %52 = vector.multi_reduction <add>, %51, %cst_20 [1] : vector<8x8xf32> to vector<8xf32>
    %53 = vector.shape_cast %52 : vector<8xf32> to vector<8x1xf32>
    %54 = tpu.reciprocal %53 {approx = true} : vector<8x1xf32> -> vector<8x1xf32>
    %cst_21 = arith.constant 1.250000e-01 : f32
    %55 = vector.broadcast %cst_21 : f32 to vector<8x1xf32>
    %56 = arith.mulf %55, %54 : vector<8x1xf32>
    %57 = vector.broadcast %56 : vector<8x1xf32> to vector<8x8xf32>
    %58 = arith.mulf %39, %57 : vector<8x8xf32>
    %cst_22 = arith.constant dense<0.000000e+00> : vector<8xf32>
    %59 = vector.multi_reduction <add>, %58, %cst_22 [0] : vector<8x8xf32> to vector<8xf32>
    %60 = vector.shape_cast %59 : vector<8xf32> to vector<1x8xf32>
    %61 = tpu.reciprocal %60 {approx = true} : vector<1x8xf32> -> vector<1x8xf32>
    %cst_23 = arith.constant 1.250000e-01 : f32
    %62 = vector.broadcast %cst_23 : f32 to vector<1x8xf32>
    %63 = arith.mulf %62, %61 : vector<1x8xf32>
    %64 = vector.broadcast %63 : vector<1x8xf32> to vector<8x8xf32>
    %65 = arith.mulf %39, %64 : vector<8x8xf32>
    %cst_24 = arith.constant dense<0.000000e+00> : vector<8xf32>
    %66 = vector.multi_reduction <add>, %65, %cst_24 [1] : vector<8x8xf32> to vector<8xf32>
    %67 = vector.shape_cast %66 : vector<8xf32> to vector<8x1xf32>
    %68 = tpu.reciprocal %67 {approx = true} : vector<8x1xf32> -> vector<8x1xf32>
    %cst_25 = arith.constant 1.250000e-01 : f32
    %69 = vector.broadcast %cst_25 : f32 to vector<8x1xf32>
    %70 = arith.mulf %69, %68 : vector<8x1xf32>
    %71 = vector.broadcast %70 : vector<8x1xf32> to vector<8x8xf32>
    %72 = arith.mulf %39, %71 : vector<8x8xf32>
    %cst_26 = arith.constant dense<0.000000e+00> : vector<8xf32>
    %73 = vector.multi_reduction <add>, %72, %cst_26 [0] : vector<8x8xf32> to vector<8xf32>
    %74 = vector.shape_cast %73 : vector<8xf32> to vector<1x8xf32>
    %75 = tpu.reciprocal %74 {approx = true} : vector<1x8xf32> -> vector<1x8xf32>
    %cst_27 = arith.constant 1.250000e-01 : f32
    %76 = vector.broadcast %cst_27 : f32 to vector<1x8xf32>
    %77 = arith.mulf %76, %75 : vector<1x8xf32>
    %78 = vector.broadcast %77 : vector<1x8xf32> to vector<8x8xf32>
    %79 = arith.mulf %39, %78 : vector<8x8xf32>
    %cst_28 = arith.constant dense<0.000000e+00> : vector<8xf32>
    %80 = vector.multi_reduction <add>, %79, %cst_28 [1] : vector<8x8xf32> to vector<8xf32>
    %81 = vector.shape_cast %80 : vector<8xf32> to vector<8x1xf32>
    %82 = tpu.reciprocal %81 {approx = true} : vector<8x1xf32> -> vector<8x1xf32>
    %cst_29 = arith.constant 1.250000e-01 : f32
    %83 = vector.broadcast %cst_29 : f32 to vector<8x1xf32>
    %84 = arith.mulf %83, %82 : vector<8x1xf32>
    %85 = vector.broadcast %84 : vector<8x1xf32> to vector<8x8xf32>
    %86 = arith.mulf %39, %85 : vector<8x8xf32>
    %cst_30 = arith.constant dense<0.000000e+00> : vector<8xf32>
    %87 = vector.multi_reduction <add>, %86, %cst_30 [0] : vector<8x8xf32> to vector<8xf32>
    %88 = vector.shape_cast %87 : vector<8xf32> to vector<1x8xf32>
    %89 = tpu.reciprocal %88 {approx = true} : vector<1x8xf32> -> vector<1x8xf32>
    %cst_31 = arith.constant 1.250000e-01 : f32
    %90 = vector.broadcast %cst_31 : f32 to vector<1x8xf32>
    %91 = arith.mulf %90, %89 : vector<1x8xf32>
    %92 = vector.broadcast %91 : vector<1x8xf32> to vector<8x8xf32>
    %93 = arith.mulf %39, %92 : vector<8x8xf32>
    %cst_32 = arith.constant dense<0.000000e+00> : vector<8xf32>
    %94 = vector.multi_reduction <add>, %93, %cst_32 [1] : vector<8x8xf32> to vector<8xf32>
    %95 = vector.shape_cast %94 : vector<8xf32> to vector<8x1xf32>
    %96 = tpu.reciprocal %95 {approx = true} : vector<8x1xf32> -> vector<8x1xf32>
    %cst_33 = arith.constant 1.250000e-01 : f32
    %97 = vector.broadcast %cst_33 : f32 to vector<8x1xf32>
    %98 = arith.mulf %97, %96 : vector<8x1xf32>
    %99 = vector.broadcast %98 : vector<8x1xf32> to vector<8x8xf32>
    %100 = arith.mulf %39, %99 : vector<8x8xf32>
    %cst_34 = arith.constant dense<0.000000e+00> : vector<8xf32>
    %101 = vector.multi_reduction <add>, %100, %cst_34 [0] : vector<8x8xf32> to vector<8xf32>
    %102 = vector.shape_cast %101 : vector<8xf32> to vector<1x8xf32>
    %103 = tpu.reciprocal %102 {approx = true} : vector<1x8xf32> -> vector<1x8xf32>
    %cst_35 = arith.constant 1.250000e-01 : f32
    %104 = vector.broadcast %cst_35 : f32 to vector<1x8xf32>
    %105 = arith.mulf %104, %103 : vector<1x8xf32>
    %106 = vector.broadcast %105 : vector<1x8xf32> to vector<8x8xf32>
    %107 = arith.mulf %39, %106 : vector<8x8xf32>
    %cst_36 = arith.constant dense<0.000000e+00> : vector<8xf32>
    %108 = vector.multi_reduction <add>, %107, %cst_36 [1] : vector<8x8xf32> to vector<8xf32>
    %109 = vector.shape_cast %108 : vector<8xf32> to vector<8x1xf32>
    %110 = tpu.reciprocal %109 {approx = true} : vector<8x1xf32> -> vector<8x1xf32>
    %cst_37 = arith.constant 1.250000e-01 : f32
    %111 = vector.broadcast %cst_37 : f32 to vector<8x1xf32>
    %112 = arith.mulf %111, %110 : vector<8x1xf32>
    %113 = vector.broadcast %112 : vector<8x1xf32> to vector<8x8xf32>
    %114 = arith.mulf %39, %113 : vector<8x8xf32>
    %cst_38 = arith.constant dense<0.000000e+00> : vector<8xf32>
    %115 = vector.multi_reduction <add>, %114, %cst_38 [0] : vector<8x8xf32> to vector<8xf32>
    %116 = vector.shape_cast %115 : vector<8xf32> to vector<1x8xf32>
    %117 = tpu.reciprocal %116 {approx = true} : vector<1x8xf32> -> vector<1x8xf32>
    %cst_39 = arith.constant 1.250000e-01 : f32
    %118 = vector.broadcast %cst_39 : f32 to vector<1x8xf32>
    %119 = arith.mulf %118, %117 : vector<1x8xf32>
    %120 = vector.broadcast %119 : vector<1x8xf32> to vector<8x8xf32>
    %121 = arith.mulf %39, %120 : vector<8x8xf32>
    %cst_40 = arith.constant dense<0.000000e+00> : vector<8xf32>
    %122 = vector.multi_reduction <add>, %121, %cst_40 [1] : vector<8x8xf32> to vector<8xf32>
    %123 = vector.shape_cast %122 : vector<8xf32> to vector<8x1xf32>
    %124 = tpu.reciprocal %123 {approx = true} : vector<8x1xf32> -> vector<8x1xf32>
    %cst_41 = arith.constant 1.250000e-01 : f32
    %125 = vector.broadcast %cst_41 : f32 to vector<8x1xf32>
    %126 = arith.mulf %125, %124 : vector<8x1xf32>
    %127 = vector.broadcast %126 : vector<8x1xf32> to vector<8x8xf32>
    %128 = arith.mulf %39, %127 : vector<8x8xf32>
    %cst_42 = arith.constant dense<0.000000e+00> : vector<8xf32>
    %129 = vector.multi_reduction <add>, %128, %cst_42 [0] : vector<8x8xf32> to vector<8xf32>
    %130 = vector.shape_cast %129 : vector<8xf32> to vector<1x8xf32>
    %131 = tpu.reciprocal %130 {approx = true} : vector<1x8xf32> -> vector<1x8xf32>
    %cst_43 = arith.constant 1.250000e-01 : f32
    %132 = vector.broadcast %cst_43 : f32 to vector<1x8xf32>
    %133 = arith.mulf %132, %131 : vector<1x8xf32>
    %134 = vector.broadcast %133 : vector<1x8xf32> to vector<8x8xf32>
    %135 = arith.mulf %39, %134 : vector<8x8xf32>
    %cst_44 = arith.constant dense<0.000000e+00> : vector<8xf32>
    %136 = vector.multi_reduction <add>, %135, %cst_44 [1] : vector<8x8xf32> to vector<8xf32>
    %137 = vector.shape_cast %136 : vector<8xf32> to vector<8x1xf32>
    %138 = tpu.reciprocal %137 {approx = true} : vector<8x1xf32> -> vector<8x1xf32>
    %cst_45 = arith.constant 1.250000e-01 : f32
    %139 = vector.broadcast %cst_45 : f32 to vector<8x1xf32>
    %140 = arith.mulf %139, %138 : vector<8x1xf32>
    %141 = vector.broadcast %140 : vector<8x1xf32> to vector<8x8xf32>
    %142 = arith.mulf %39, %141 : vector<8x8xf32>
    %cst_46 = arith.constant dense<0.000000e+00> : vector<8xf32>
    %143 = vector.multi_reduction <add>, %142, %cst_46 [0] : vector<8x8xf32> to vector<8xf32>
    %144 = vector.shape_cast %143 : vector<8xf32> to vector<1x8xf32>
    %cst_47 = arith.constant 1.250000e-01 : f32
    %145 = vector.broadcast %cst_47 : f32 to vector<1x8xf32>
    %146 = arith.divf %145, %144 : vector<1x8xf32>
    %147 = vector.broadcast %146 : vector<1x8xf32> to vector<8x8xf32>
    %148 = arith.mulf %39, %147 : vector<8x8xf32>
    %cst_48 = arith.constant dense<0.000000e+00> : vector<8xf32>
    %149 = vector.multi_reduction <add>, %148, %cst_48 [1] : vector<8x8xf32> to vector<8xf32>
    %150 = vector.shape_cast %149 : vector<8xf32> to vector<8x1xf32>
    %cst_49 = arith.constant 1.250000e-01 : f32
    %151 = vector.broadcast %cst_49 : f32 to vector<8x1xf32>
    %152 = arith.divf %151, %150 : vector<8x1xf32>
    %153 = arith.mulf %39, %25 : vector<8x8xf32>
    %154 = vector.broadcast %146 : vector<1x8xf32> to vector<8x8xf32>
    %155 = arith.mulf %153, %154 : vector<8x8xf32>
    %cst_50 = arith.constant dense<0.000000e+00> : vector<8xf32>
    %156 = vector.multi_reduction <add>, %155, %cst_50 [1] : vector<8x8xf32> to vector<8xf32>
    %157 = vector.shape_cast %156 : vector<8xf32> to vector<8x1xf32>
    %158 = arith.mulf %152, %157 : vector<8x1xf32>
    %cst_51 = arith.constant dense<0.000000e+00> : vector<1xf32>
    %159 = vector.multi_reduction <add>, %158, %cst_51 [0] : vector<8x1xf32> to vector<1xf32>
    %160 = vector.shape_cast %159 : vector<1xf32> to vector<1x1xf32>
    %161 = vector.broadcast %31 : f32 to vector<1x1xf32>
    %162 = arith.mulf %161, %160 : vector<1x1xf32>
    %c0_52 = arith.constant 0 : index
    %c0_53 = arith.constant 0 : index
    %163 = vector.load %arg4[%c0_52, %c0_53] : memref<1x1xf32, #tpu.memory_space<vmem>>, vector<1x1xf32>
    tpu.vector_store %arg4[%c0_52, %c0_53], %162 {strides = array<i32>} : memref<1x1xf32, #tpu.memory_space<vmem>>, vector<1x1xf32>,
    return
  }
  func.func @transform_0(%arg0: i32) -> i32 {
    %c0_i32 = arith.constant 0 : i32
    %c0_i32_0 = arith.constant 0 : i32
    return %c0_i32 : i32
  }
  func.func @transform_1(%arg0: i32) -> (i32, i32) {
    %c0_i32 = arith.constant 0 : i32
    %c0_i32_0 = arith.constant 0 : i32
    %c0_i32_1 = arith.constant 0 : i32
    return %c0_i32, %c0_i32_0 : i32, i32
  }
  func.func @transform_2(%arg0: i32) -> (i32, i32) {
    %c0_i32 = arith.constant 0 : i32
    %c0_i32_0 = arith.constant 0 : i32
    %c0_i32_1 = arith.constant 0 : i32
    return %c0_i32, %c0_i32_0 : i32, i32
  }
  func.func @transform_3(%arg0: i32) -> (i32, i32) {
    %c0_i32 = arith.constant 0 : i32
    %c0_i32_0 = arith.constant 0 : i32
    %c0_i32_1 = arith.constant 0 : i32
    return %c0_i32, %c0_i32_0 : i32, i32
  }
}

</mosaic_0001>

<bundles_post_ra>
// kernel: tpu_custom_call.1
= control target key start
LH: loop header
LB: loop body
LE: loop exit
PB: predicated region body
PF: predicated region fallthrough
CT: control target
= control target key end

     0   :  { %9 = vsyncpa [#allocation4], 0  ;;  %s834_s0 = inlined_call_operand.<no memory space> [shape: f32[1], index: 0, kind: input, shape index: {}]   ;;  %s835_s1 = inlined_call_operand.hbm [shape: f32[8,32], index: 1, kind: input, shape index: {}]   ;;  %s836_s2 = inlined_call_operand.hbm [shape: f32[8,32], index: 2, kind: input, shape index: {}]   ;;  %s837_s3 = inlined_call_operand.hbm [shape: f32[1,1], index: 3, kind: output, shape index: {}]  }
   0x1   :  { %10 = vsyncpa [#allocation7], 0 }
   0x2   :  { %11 = vsyncpa [#allocation5], 0  ;;  %s19_s14 = sshll.u32 %s835_s1, 4  ;;  %s706_s15 = smov [#allocation3]   ;;  %s20_s14 = int_to_ptr.hbm [resolvable:$true] %s19_s14 }
   0x3   :  { %s21_s16 = sshll.u32 %s706_s15, 4  ;;  %s30_s19 = sshll.u32 %s836_s2, 4  ;;  %s22_s16 = int_to_ptr.vmem [resolvable:$true] %s21_s16  ;;  %s31_s19 = int_to_ptr.hbm [resolvable:$true] %s30_s19 }
   0x4   :  { %24 = dma.hbm_to_vmem [thread:$0]  %s20_s14, 128, %s22_s16, [#allocation4]  }
   0x5   :  { %s707_s20 = smov [#allocation6]  }
   0x6   :  { %s32_s21 = sshll.u32 %s707_s20, 4  ;;  %s33_s21 = int_to_ptr.vmem [resolvable:$true] %s32_s21 }
   0x7   :  { %35 = dma.hbm_to_vmem [thread:$0]  %s31_s19, 128, %s33_s21, [#allocation7]  }
   0x8   :  { %692 = dma.done.wait [#allocation4], 128  }
   0x9   :  { %693 = vsyncadd [#allocation4], 4294967168 }
   0xa   :  { %694 = dma.done.wait [#allocation7], 128  }
   0xb   :  { %695 = vsyncadd [#allocation7], 4294967168  ;;  %v45_v0 = vld [vmem:[#allocation6] sm:$0xff]  ;;  %vm49_vm0 = vcmask 261120   ;;  %v44_v1 = vld [vmem:[#allocation3] sm:$0xff]  ;;  %v708_v9 = vmov 1.0   ;;  %v155_v37 = vstv %s834_s0 }
   0xc   :  { %v53_v2 = vmul.f32 %v45_v0, %v45_v0  ;;  %v54_v3 = vmul.f32 2e-06, %v45_v0  ;;  %511 = vmatpush.xpose.msk.msra.mxu1 %vm49_vm0, %v45_v0  ;;  %v46_v4 = vmul.f32 %v44_v1, %v44_v1  ;;  %v47_v5 = vmul.f32 2e-06, %v44_v1  ;;  %s709_s23 = smov 1e-30  }
   0xd   :  { %vm126_vm2 = vcmask 64512   ;;  %vm161_vm4 = vweird.f32 %v155_v37  ;;  %v167_v45 = vand.u32 2147483648, %v155_v37  ;;  %v165_v47 = vand.u32 2147483647, %v155_v37  ;;  %s752_s28 = smov 0  }
   0xe   :  { %v55_v6 = vsub.f32 %v53_v2, %v54_v3  ;;  %v48_v7 = vadd.f32 %v47_v5, %v46_v4  ;;  %v750_v0 = vmov 0.125  }
   0xf   :  { %512 = vmatmul.msk.f32.vlgmr.msra.gmra.mxu1 %vm49_vm0, %v44_v1  ;;  %v168_v52 = vor.u32 1.1754944e-38, %v167_v45  ;;  %vm166_vm8 = vcmp.eq.f32.partialorder %v165_v47, 8.507059e+37 }
  0x10   :  { %509 = vmatpush.xpose.msk.msra.mxu0 %vm49_vm0, %v55_v6  ;;  %v50_v8 = vsel %vm49_vm0, %v48_v7, 0.0 }
  0x11   :  { %51 = vadd.xlane.f32.xlu0 %v50_v8 }
  0x13   :  { %510 = vmatmul.msk.f32.vlgmr.msra.gmra.mxu0 %vm49_vm0, %v708_v9 }
  0x84   :  { %v52_v12 = vpop.xlane.xlu0 %51 }
  0x8c   :  { %v105_v10 = vpop.f32.mrf.mxu1 }
  0x8d   :  { %v110_v14 = vmul.f32 2.0, %v105_v10 }
  0x90   :  { %v79_v11 = vpop.f32.mrf.mxu0 }
  0x91   :  { %v108_v13 = vperm.slane %v79_v11, 0 }
  0x93   :  { %v109_v15 = vadd.f32 %v108_v13, %v52_v12 }
  0x95   :  { %v111_v16 = vsub.f32 %v109_v15, %v110_v14 }
  0x97   :  { %v112_v17 = vadd.f32 3.2e-11, %v111_v16 }
  0x99   :  { %v113_v18 = vmax.f32 %v112_v17, 0.0 }
  0x9b   :  { %540 = vrsqrt.f32 %v113_v18  ;;  %vm121_vm1 = vcmp.eq.f32.partialorder %v113_v18, inf  ;;  %v124_v26 = vand.u32 2147483648, %v113_v18  ;;  %vm123_vm3 = vcmp.eq.f32.partialorder %v113_v18, 0.0 }
  0x9c   :  { %542 = vrcp.f32 %v155_v37 }
  0xa1   :  { %v541_v19 = vpop.eup %540 }
  0xa2   :  { %v115_v20 = vmul.f32 %v541_v19, %v113_v18  ;;  %v543_v38 = vpop.eup %542 }
  0xa3   :  { %v157_v39 = vmul.f32 %v543_v38, %v155_v37  ;;  %vm162_vm5 = vweird.f32 %v543_v38 }
  0xa4   :  { %v116_v21 = vmul.f32 %v541_v19, %v115_v20  ;;  %vm163_vm6 = vmor %vm161_vm4, %vm162_vm5 }
  0xa5   :  { %v158_v41 = vsub.f32 1.0, %v157_v39 }
  0xa6   :  { %v117_v22 = vmul.f32 0.5, %v116_v21 }
  0xa7   :  { %v159_v42 = vmul.f32 %v543_v38, %v158_v41 }
  0xa8   :  { %v118_v23 = vsub.f32 1.5, %v117_v22 }
  0xa9   :  { %v160_v46 = vadd.f32 %v543_v38, %v159_v42 }
  0xaa   :  { %v119_v24 = vmul.f32 %v541_v19, %v118_v23 }
  0xab   :  { %v164_v53 = vsel %vm163_vm6, %v543_v38, %v160_v46 }
  0xac   :  { %v120_v25 = vmul.f32 %v119_v24, %v113_v18  ;;  %v169_v57 = vsel %vm166_vm8, %v168_v52, %v164_v53 }
  0xae   :  { %v122_v27 = vsel %vm121_vm1, %v113_v18, %v120_v25 }
  0xaf   :  { %v737_v28 = vsel %vm123_vm3, %v124_v26, %v122_v27 }
  0xb0   :  { %v127_v29 = vsel %vm126_vm2, %v737_v28, -inf }
  0xb1   :  { %128 = vmax.xlane.f32.xlu0 %v127_v29 }
 0x124   :  { %v129_v30 = vpop.xlane.xlu0 %128 }
 0x125   :  { %v130_v31 = vrot.slane %v129_v30, 4 }
 0x127   :  { %v131_v32 = vmax.f32 %v129_v30, %v130_v31 }
 0x129   :  { %v132_v33 = vrot.slane %v131_v32, 2 }
 0x12b   :  { %v133_v34 = vmax.f32 %v131_v32, %v132_v33 }
 0x12d   :  { %v134_v35 = vrot.slane %v133_v34, 1 }
 0x12f   :  { %v135_v36 = vmax.f32 %v133_v34, %v134_v35 }
 0x131   :  { %513 = vpush %v135_v36 }
 0x162   :  { %s514_s22 = spop %513 }
 0x163   :  { %s137_s24 = smax.f32 %s709_s23, %s514_s22 }
 0x164   :  { %v138_v40 = vstv %s137_s24 }
 0x165   :  { %544 = vrcp.f32 %v138_v40  ;;  %v150_v49 = vand.u32 2147483648, %v138_v40  ;;  %v148_v51 = vand.u32 2147483647, %v138_v40  ;;  %vm144_vm9 = vweird.f32 %v138_v40 }
 0x167   :  { %v151_v55 = vor.u32 1.1754944e-38, %v150_v49  ;;  %vm149_vm11 = vcmp.eq.f32.partialorder %v148_v51, 8.507059e+37 }
 0x16b   :  { %v545_v43 = vpop.eup %544 }
 0x16c   :  { %v140_v44 = vmul.f32 %v545_v43, %v138_v40  ;;  %vm145_vm7 = vweird.f32 %v545_v43 }
 0x16d   :  { %vm146_vm10 = vmor %vm144_vm9, %vm145_vm7 }
 0x16e   :  { %v141_v48 = vsub.f32 1.0, %v140_v44 }
 0x170   :  { %v142_v50 = vmul.f32 %v545_v43, %v141_v48 }
 0x172   :  { %v143_v54 = vadd.f32 %v545_v43, %v142_v50 }
 0x174   :  { %v147_v56 = vsel %vm146_vm10, %v545_v43, %v143_v54 }
 0x175   :  { %v152_v58 = vsel %vm149_vm11, %v151_v55, %v147_v56 }
 0x176   :  { %515 = vpush %v152_v58 }
 0x177   :  { %517 = vpush %v169_v57 }
 0x1a7   :  { %s744_s0 = spop %515 }
 0x1a8   :  { %s518_s25 = spop %517 }
 0x1a9   :  { %s171_s26 = smul.f32 %s518_s25, %s744_s0 }
 0x1ab   :  { %s172_s27 = ssub.f32 0.0, %s171_s26 }
 0x1ad   :  { %v173_v59 = vstv %s172_s27 }
 0x1ae   :  { %v174_v60 = vmul.f32 %v173_v59, %v737_v28 }
 0x1b0   :  { %v175_v61 = vmul.f32 1.442695, %v174_v60 }
 0x1b2   :  { %546 = vpow2.f32 %v175_v61 }
 0x1b8   :  { %v547_v62 = vpop.eup %546 }
 0x1b9   :  { %v748_v63 = vmax.f32 %v547_v62, 1e-30 }
 0x1ba LB: > { %s183_s28 = sadd.s32 1, %s704_s28   ;;  %s704_s28 = sphi %s752_s28, %s183_s28   ;;  %v700_v0 = vphi %v750_v0, %v838_v0  }
 0x1bb   : > { %v185_v1 = vmul.f32 %v700_v0, %v748_v63  ;;  %p180_p0 = scmp.ge.s32.totalorder %s183_s28, 24  }
 0x1bc   :  { %s710_s29 = smov (%p180_p0), [#allocation8]   ;;  %s490_s6 = sshll.u32 (%p180_p0), %s837_s3, 4  ;;  %s491_s6 = int_to_ptr.hbm [resolvable:$true] %s490_s6 }
 0x1bd   : > { %v186_v2 = vsel %vm126_vm2, %v185_v1, 0.0  ;;  %s488_s30 = sshll.u32 (%p180_p0), %s710_s29, 4  ;;  %s489_s30 = int_to_ptr.vmem [resolvable:$true] %s488_s30 }
 0x1be   : > { %v187_v3 = vrot.slane %v186_v2, 4 }
 0x1c0   : > { %v188_v4 = vadd.f32 %v187_v3, %v186_v2 }
 0x1c2   : > { %v189_v5 = vrot.slane %v188_v4, 2 }
 0x1c4   : > { %v190_v6 = vadd.f32 %v189_v5, %v188_v4 }
 0x1c6   : > { %v191_v7 = vrot.slane %v190_v6, 1 }
 0x1c8   : > { %v192_v8 = vadd.f32 %v191_v7, %v190_v6 }
 0x1ca   : > { %548 = vrcp.f32 %v192_v8 }
 0x1d0   : > { %v549_v9 = vpop.eup %548 }
 0x1d1   : > { %v194_v10 = vmul.f32 0.125, %v549_v9 }
 0x1d3   : > { %v195_v11 = vmul.f32 %v194_v10, %v748_v63 }
 0x1d5   : > { %v196_v12 = vsel %vm126_vm2, %v195_v11, 0.0 }
 0x1d6   : > { %197 = vadd.xlane.f32.xlu0 %v196_v12 }
 0x249   : > { %v198_v13 = vpop.xlane.xlu0 %197 }
 0x24a   : > { %550 = vrcp.f32 %v198_v13 }
 0x250   : > { %v551_v14 = vpop.eup %550 }
 0x251   : > { %v200_v15 = vmul.f32 0.125, %v551_v14 }
 0x253   : > { %v201_v16 = vmul.f32 %v200_v15, %v748_v63 }
 0x255   : > { %v202_v17 = vsel %vm126_vm2, %v201_v16, 0.0 }
 0x256   : > { %v203_v18 = vrot.slane %v202_v17, 4 }
 0x258   : > { %v204_v19 = vadd.f32 %v203_v18, %v202_v17 }
 0x25a   : > { %v205_v20 = vrot.slane %v204_v19, 2 }
 0x25c   : > { %v206_v21 = vadd.f32 %v205_v20, %v204_v19 }
 0x25e   : > { %v207_v22 = vrot.slane %v206_v21, 1 }
 0x260   : > { %v208_v23 = vadd.f32 %v207_v22, %v206_v21 }
 0x262   : > { %552 = vrcp.f32 %v208_v23 }
 0x268   : > { %v553_v24 = vpop.eup %552 }
 0x269   : > { %v210_v25 = vmul.f32 0.125, %v553_v24 }
 0x26b   : > { %v211_v26 = vmul.f32 %v210_v25, %v748_v63 }
 0x26d   : > { %v212_v27 = vsel %vm126_vm2, %v211_v26, 0.0 }
 0x26e   : > { %213 = vadd.xlane.f32.xlu0 %v212_v27 }
 0x2e1   : > { %v214_v29 = vpop.xlane.xlu0 %213 }
 0x2e2   : > { %554 = vrcp.f32 %v214_v29 }
 0x2e8   : > { %v555_v30 = vpop.eup %554 }
 0x2e9   : > { %v216_v31 = vmul.f32 0.125, %v555_v30 }
 0x2eb   : > { %v217_v32 = vmul.f32 %v216_v31, %v748_v63 }
 0x2ed   : > { %v218_v33 = vsel %vm126_vm2, %v217_v32, 0.0 }
 0x2ee   : > { %v219_v34 = vrot.slane %v218_v33, 4 }
 0x2f0   : > { %v220_v35 = vadd.f32 %v219_v34, %v218_v33 }
 0x2f2   : > { %v221_v36 = vrot.slane %v220_v35, 2 }
 0x2f4   : > { %v222_v37 = vadd.f32 %v221_v36, %v220_v35 }
 0x2f6   : > { %v223_v38 = vrot.slane %v222_v37, 1 }
 0x2f8   : > { %v224_v39 = vadd.f32 %v223_v38, %v222_v37 }
 0x2fa   : > { %556 = vrcp.f32 %v224_v39 }
 0x300   : > { %v557_v40 = vpop.eup %556 }
 0x301   : > { %v226_v41 = vmul.f32 0.125, %v557_v40 }
 0x303   : > { %v227_v42 = vmul.f32 %v226_v41, %v748_v63 }
 0x305   : > { %v228_v43 = vsel %vm126_vm2, %v227_v42, 0.0 }
 0x306   : > { %229 = vadd.xlane.f32.xlu1 %v228_v43 }
 0x379   : > { %v230_v44 = vpop.xlane.xlu1 %229 }
 0x37a   : > { %558 = vrcp.f32 %v230_v44 }
 0x380   : > { %v559_v45 = vpop.eup %558 }
 0x381   : > { %v232_v46 = vmul.f32 0.125, %v559_v45 }
 0x383   : > { %v233_v47 = vmul.f32 %v232_v46, %v748_v63 }
 0x385   : > { %v234_v48 = vsel %vm126_vm2, %v233_v47, 0.0 }
 0x386   : > { %v235_v49 = vrot.slane %v234_v48, 4 }
 0x388   : > { %v236_v50 = vadd.f32 %v235_v49, %v234_v48 }
 0x38a   : > { %v237_v51 = vrot.slane %v236_v50, 2 }
 0x38c   : > { %v238_v52 = vadd.f32 %v237_v51, %v236_v50 }
 0x38e   : > { %v239_v53 = vrot.slane %v238_v52, 1 }
 0x390   : > { %v240_v54 = vadd.f32 %v239_v53, %v238_v52 }
 0x392   : > { %560 = vrcp.f32 %v240_v54 }
 0x398   : > { %v561_v55 = vpop.eup %560 }
 0x399   : > { %v242_v56 = vmul.f32 0.125, %v561_v55 }
 0x39b   : > { %v243_v57 = vmul.f32 %v242_v56, %v748_v63 }
 0x39d   : > { %v244_v58 = vsel %vm126_vm2, %v243_v57, 0.0 }
 0x39e   : > { %245 = vadd.xlane.f32.xlu1 %v244_v58 }
 0x411   : > { %v246_v59 = vpop.xlane.xlu1 %245 }
 0x412   : > { %562 = vrcp.f32 %v246_v59 }
 0x418   : > { %v563_v60 = vpop.eup %562 }
 0x419   : > { %v248_v61 = vmul.f32 0.125, %v563_v60 }
 0x41b   : > { %v249_v62 = vmul.f32 %v248_v61, %v748_v63 }
 0x41d   : > { %v250_v0 = vsel %vm126_vm2, %v249_v62, 0.0 }
 0x41e   : > { %v251_v1 = vrot.slane %v250_v0, 4 }
 0x420   : > { %v252_v2 = vadd.f32 %v251_v1, %v250_v0 }
 0x422   : > { %v253_v3 = vrot.slane %v252_v2, 2 }
 0x424   : > { %v254_v4 = vadd.f32 %v253_v3, %v252_v2 }
 0x426   : > { %v255_v5 = vrot.slane %v254_v4, 1 }
 0x428   : > { %v256_v6 = vadd.f32 %v255_v5, %v254_v4 }
 0x42a   : > { %564 = vrcp.f32 %v256_v6 }
 0x430   : > { %v565_v7 = vpop.eup %564 }
 0x431   : > { %v258_v8 = vmul.f32 0.125, %v565_v7 }
 0x433   : > { %v259_v9 = vmul.f32 %v258_v8, %v748_v63 }
 0x435   : > { %v260_v10 = vsel %vm126_vm2, %v259_v9, 0.0 }
 0x436   : > { %261 = vadd.xlane.f32.xlu2 %v260_v10 }
 0x4a9   : > { %v262_v11 = vpop.xlane.xlu2 %261 }
 0x4aa   : > { %566 = vrcp.f32 %v262_v11 }
 0x4b0   : > { %v567_v12 = vpop.eup %566 }
 0x4b1   : > { %v264_v13 = vmul.f32 0.125, %v567_v12 }
 0x4b3   : > { %v265_v14 = vmul.f32 %v264_v13, %v748_v63 }
 0x4b5   : > { %v266_v15 = vsel %vm126_vm2, %v265_v14, 0.0 }
 0x4b6   : > { %v267_v16 = vrot.slane %v266_v15, 4 }
 0x4b8   : > { %v268_v17 = vadd.f32 %v267_v16, %v266_v15 }
 0x4ba   : > { %v269_v18 = vrot.slane %v268_v17, 2 }
 0x4bc   : > { %v270_v19 = vadd.f32 %v269_v18, %v268_v17 }
 0x4be   : > { %v271_v20 = vrot.slane %v270_v19, 1 }
 0x4c0   : > { %v272_v21 = vadd.f32 %v271_v20, %v270_v19 }
 0x4c2   : > { %568 = vrcp.f32 %v272_v21 }
 0x4c8   : > { %v569_v22 = vpop.eup %568 }
 0x4c9   : > { %v274_v23 = vmul.f32 0.125, %v569_v22 }
 0x4cb   : > { %v275_v24 = vmul.f32 %v274_v23, %v748_v63 }
 0x4cd   : > { %v276_v25 = vsel %vm126_vm2, %v275_v24, 0.0 }
 0x4ce   : > { %277 = vadd.xlane.f32.xlu2 %v276_v25 }
 0x541   : > { %v278_v26 = vpop.xlane.xlu2 %277 }
 0x542   : > { %570 = vrcp.f32 %v278_v26 }
 0x548   : > { %v571_v27 = vpop.eup %570 }
 0x549   : > { %v280_v29 = vmul.f32 0.125, %v571_v27 }
 0x54b   : > { %v281_v30 = vmul.f32 %v280_v29, %v748_v63 }
 0x54d   : > { %v282_v31 = vsel %vm126_vm2, %v281_v30, 0.0 }
 0x54e   : > { %v283_v32 = vrot.slane %v282_v31, 4 }
 0x550   : > { %v284_v33 = vadd.f32 %v283_v32, %v282_v31 }
 0x552   : > { %v285_v34 = vrot.slane %v284_v33, 2 }
 0x554   : > { %v286_v35 = vadd.f32 %v285_v34, %v284_v33 }
 0x556   : > { %v287_v36 = vrot.slane %v286_v35, 1 }
 0x558   : > { %v288_v37 = vadd.f32 %v287_v36, %v286_v35 }
 0x55a   : > { %572 = vrcp.f32 %v288_v37 }
 0x560   : > { %v573_v38 = vpop.eup %572 }
 0x561   : > { %v290_v39 = vmul.f32 0.125, %v573_v38 }
 0x563   : > { %v291_v40 = vmul.f32 %v290_v39, %v748_v63 }
 0x565   : > { %v292_v41 = vsel %vm126_vm2, %v291_v40, 0.0 }
 0x566   : > { %293 = vadd.xlane.f32.xlu0 %v292_v41 }
 0x5d9   : > { %v294_v42 = vpop.xlane.xlu0 %293 }
 0x5da   : > { %574 = vrcp.f32 %v294_v42 }
 0x5e0   : > { %v575_v43 = vpop.eup %574 }
 0x5e1   : > { %v296_v44 = vmul.f32 0.125, %v575_v43 }
 0x5e3   : > { %v297_v45 = vmul.f32 %v296_v44, %v748_v63 }
 0x5e5   : > { %v298_v46 = vsel %vm126_vm2, %v297_v45, 0.0 }
 0x5e6   : > { %v299_v47 = vrot.slane %v298_v46, 4 }
 0x5e8   : > { %v300_v48 = vadd.f32 %v299_v47, %v298_v46 }
 0x5ea   : > { %v301_v49 = vrot.slane %v300_v48, 2 }
 0x5ec   : > { %v302_v50 = vadd.f32 %v301_v49, %v300_v48 }
 0x5ee   : > { %v303_v51 = vrot.slane %v302_v50, 1 }
 0x5f0   : > { %v304_v52 = vadd.f32 %v303_v51, %v302_v50 }
 0x5f2   : > { %576 = vrcp.f32 %v304_v52 }
 0x5f8   : > { %v577_v53 = vpop.eup %576 }
 0x5f9   : > { %v306_v54 = vmul.f32 0.125, %v577_v53 }
 0x5fb   : > { %v307_v55 = vmul.f32 %v306_v54, %v748_v63 }
 0x5fd   : > { %v308_v56 = vsel %vm126_vm2, %v307_v55, 0.0 }
 0x5fe   : > { %309 = vadd.xlane.f32.xlu1 %v308_v56 }
 0x671   : > { %v310_v57 = vpop.xlane.xlu1 %309 }
 0x672   : > { %578 = vrcp.f32 %v310_v57 }
 0x677   :  { %182 = sbr.rel (!%p180_p0) target bundleno = 442 (0x1ba), region = 47 }
 0x678   : > { %v579_v58 = vpop.eup %578 }
 0x679   : > { %v312_v59 = vmul.f32 0.125, %v579_v58  }
 0x67b   : > { %v838_v0 = vmov %v312_v59  ;;  %v313_v60 = vmul.f32 (%p180_p0), %v312_v59, %v748_v63 }
 0x67d   :  { %v314_v61 = vsel %vm126_vm2, %v313_v60, 0.0 }
 0x67e   :  { %v315_v62 = vrot.slane %v314_v61, 4 }
 0x680   :  { %v316_v0 = vadd.f32 %v315_v62, %v314_v61 }
 0x682   :  { %v317_v1 = vrot.slane %v316_v0, 2 }
 0x684   :  { %v318_v2 = vadd.f32 %v317_v1, %v316_v0 }
 0x686   :  { %v319_v3 = vrot.slane %v318_v2, 1 }
 0x688   :  { %v320_v4 = vadd.f32 %v319_v3, %v318_v2 }
 0x68a   :  { %580 = vrcp.f32 %v320_v4 }
 0x690   :  { %v581_v5 = vpop.eup %580 }
 0x691   :  { %v322_v6 = vmul.f32 0.125, %v581_v5 }
 0x693   :  { %v323_v7 = vmul.f32 %v322_v6, %v748_v63 }
 0x695   :  { %v324_v8 = vsel %vm126_vm2, %v323_v7, 0.0 }
 0x696   :  { %325 = vadd.xlane.f32.xlu0 %v324_v8 }
 0x709   :  { %v326_v9 = vpop.xlane.xlu0 %325 }
 0x70a   :  { %582 = vrcp.f32 %v326_v9 }
 0x710   :  { %v583_v10 = vpop.eup %582 }
 0x711   :  { %v328_v11 = vmul.f32 0.125, %v583_v10 }
 0x713   :  { %v329_v12 = vmul.f32 %v328_v11, %v748_v63 }
 0x715   :  { %v330_v13 = vsel %vm126_vm2, %v329_v12, 0.0 }
 0x716   :  { %v331_v14 = vrot.slane %v330_v13, 4 }
 0x718   :  { %v332_v15 = vadd.f32 %v331_v14, %v330_v13 }
 0x71a   :  { %v333_v16 = vrot.slane %v332_v15, 2 }
 0x71c   :  { %v334_v17 = vadd.f32 %v333_v16, %v332_v15 }
 0x71e   :  { %v335_v18 = vrot.slane %v334_v17, 1 }
 0x720   :  { %v336_v19 = vadd.f32 %v335_v18, %v334_v17 }
 0x722   :  { %584 = vrcp.f32 %v336_v19 }
 0x728   :  { %v585_v20 = vpop.eup %584 }
 0x729   :  { %v338_v21 = vmul.f32 0.125, %v585_v20 }
 0x72b   :  { %v339_v22 = vmul.f32 %v338_v21, %v748_v63 }
 0x72d   :  { %v340_v23 = vsel %vm126_vm2, %v339_v22, 0.0 }
 0x72e   :  { %341 = vadd.xlane.f32.xlu0 %v340_v23 }
 0x7a1   :  { %v342_v24 = vpop.xlane.xlu0 %341 }
 0x7a2   :  { %586 = vrcp.f32 %v342_v24 }
 0x7a8   :  { %v587_v25 = vpop.eup %586 }
 0x7a9   :  { %v344_v26 = vmul.f32 0.125, %v587_v25 }
 0x7ab   :  { %v345_v27 = vmul.f32 %v344_v26, %v748_v63 }
 0x7ad   :  { %v346_v29 = vsel %vm126_vm2, %v345_v27, 0.0 }
 0x7ae   :  { %v347_v30 = vrot.slane %v346_v29, 4 }
 0x7b0   :  { %v348_v31 = vadd.f32 %v347_v30, %v346_v29 }
 0x7b2   :  { %v349_v32 = vrot.slane %v348_v31, 2 }
 0x7b4   :  { %v350_v33 = vadd.f32 %v349_v32, %v348_v31 }
 0x7b6   :  { %v351_v34 = vrot.slane %v350_v33, 1 }
 0x7b8   :  { %v352_v35 = vadd.f32 %v351_v34, %v350_v33 }
 0x7ba   :  { %588 = vrcp.f32 %v352_v35 }
 0x7c0   :  { %v589_v36 = vpop.eup %588 }
 0x7c1   :  { %v354_v37 = vmul.f32 0.125, %v589_v36 }
 0x7c3   :  { %v355_v38 = vmul.f32 %v354_v37, %v748_v63 }
 0x7c5   :  { %v356_v39 = vsel %vm126_vm2, %v355_v38, 0.0 }
 0x7c6   :  { %357 = vadd.xlane.f32.xlu1 %v356_v39 }
 0x839   :  { %v358_v40 = vpop.xlane.xlu1 %357 }
 0x83a   :  { %590 = vrcp.f32 %v358_v40 }
 0x840   :  { %v591_v41 = vpop.eup %590 }
 0x841   :  { %v360_v42 = vmul.f32 0.125, %v591_v41 }
 0x843   :  { %v361_v43 = vmul.f32 %v360_v42, %v748_v63 }
 0x845   :  { %v362_v44 = vsel %vm126_vm2, %v361_v43, 0.0 }
 0x846   :  { %v363_v45 = vrot.slane %v362_v44, 4 }
 0x848   :  { %v364_v46 = vadd.f32 %v363_v45, %v362_v44 }
 0x84a   :  { %v365_v47 = vrot.slane %v364_v46, 2 }
 0x84c   :  { %v366_v48 = vadd.f32 %v365_v47, %v364_v46 }
 0x84e   :  { %v367_v49 = vrot.slane %v366_v48, 1 }
 0x850   :  { %v368_v50 = vadd.f32 %v367_v49, %v366_v48 }
 0x852   :  { %592 = vrcp.f32 %v368_v50 }
 0x858   :  { %v593_v51 = vpop.eup %592 }
 0x859   :  { %v370_v52 = vmul.f32 0.125, %v593_v51 }
 0x85b   :  { %v371_v53 = vmul.f32 %v370_v52, %v748_v63 }
 0x85d   :  { %v372_v54 = vsel %vm126_vm2, %v371_v53, 0.0 }
 0x85e   :  { %373 = vadd.xlane.f32.xlu1 %v372_v54 }
 0x8d1   :  { %v374_v55 = vpop.xlane.xlu1 %373 }
 0x8d2   :  { %594 = vrcp.f32 %v374_v55 }
 0x8d8   :  { %v595_v56 = vpop.eup %594 }
 0x8d9   :  { %v376_v57 = vmul.f32 0.125, %v595_v56 }
 0x8db   :  { %v377_v58 = vmul.f32 %v376_v57, %v748_v63 }
 0x8dd   :  { %v378_v59 = vsel %vm126_vm2, %v377_v58, 0.0  ;;  %v467_v58 = vmul.f32 %v748_v63, %v737_v28 }
 0x8de   :  { %v379_v60 = vrot.slane %v378_v59, 4 }
 0x8e0   :  { %v380_v61 = vadd.f32 %v379_v60, %v378_v59 }
 0x8e2   :  { %v381_v62 = vrot.slane %v380_v61, 2 }
 0x8e4   :  { %v382_v0 = vadd.f32 %v381_v62, %v380_v61 }
 0x8e6   :  { %v383_v1 = vrot.slane %v382_v0, 1 }
 0x8e8   :  { %v384_v2 = vadd.f32 %v383_v1, %v382_v0 }
 0x8ea   :  { %596 = vrcp.f32 %v384_v2 }
 0x8f0   :  { %v597_v3 = vpop.eup %596 }
 0x8f1   :  { %v386_v4 = vmul.f32 0.125, %v597_v3 }
 0x8f3   :  { %v387_v5 = vmul.f32 %v386_v4, %v748_v63 }
 0x8f5   :  { %v388_v6 = vsel %vm126_vm2, %v387_v5, 0.0 }
 0x8f6   :  { %389 = vadd.xlane.f32.xlu2 %v388_v6 }
 0x969   :  { %v390_v7 = vpop.xlane.xlu2 %389 }
 0x96a   :  { %598 = vrcp.f32 %v390_v7 }
 0x970   :  { %v599_v8 = vpop.eup %598 }
 0x971   :  { %v392_v9 = vmul.f32 0.125, %v599_v8 }
 0x973   :  { %v393_v10 = vmul.f32 %v392_v9, %v748_v63 }
 0x975   :  { %v394_v11 = vsel %vm126_vm2, %v393_v10, 0.0 }
 0x976   :  { %v395_v12 = vrot.slane %v394_v11, 4 }
 0x978   :  { %v396_v13 = vadd.f32 %v395_v12, %v394_v11 }
 0x97a   :  { %v397_v14 = vrot.slane %v396_v13, 2 }
 0x97c   :  { %v398_v15 = vadd.f32 %v397_v14, %v396_v13 }
 0x97e   :  { %v399_v16 = vrot.slane %v398_v15, 1 }
 0x980   :  { %v400_v17 = vadd.f32 %v399_v16, %v398_v15 }
 0x982   :  { %600 = vrcp.f32 %v400_v17 }
 0x988   :  { %v601_v18 = vpop.eup %600 }
 0x989   :  { %v402_v19 = vmul.f32 0.125, %v601_v18 }
 0x98b   :  { %v403_v20 = vmul.f32 %v402_v19, %v748_v63  ;;  %v479_v19 = vstv %s744_s0 }
 0x98d   :  { %v404_v21 = vsel %vm126_vm2, %v403_v20, 0.0 }
 0x98e   :  { %405 = vadd.xlane.f32.xlu2 %v404_v21 }
 0xa01   :  { %v406_v22 = vpop.xlane.xlu2 %405 }
 0xa02   :  { %602 = vrcp.f32 %v406_v22 }
 0xa08   :  { %v603_v23 = vpop.eup %602 }
 0xa09   :  { %v408_v24 = vmul.f32 0.125, %v603_v23 }
 0xa0b   :  { %v409_v25 = vmul.f32 %v408_v24, %v748_v63 }
 0xa0d   :  { %v410_v26 = vsel %vm126_vm2, %v409_v25, 0.0 }
 0xa0e   :  { %v411_v27 = vrot.slane %v410_v26, 4 }
 0xa10   :  { %v412_v29 = vadd.f32 %v411_v27, %v410_v26 }
 0xa12   :  { %v413_v30 = vrot.slane %v412_v29, 2 }
 0xa14   :  { %v414_v31 = vadd.f32 %v413_v30, %v412_v29 }
 0xa16   :  { %v415_v32 = vrot.slane %v414_v31, 1 }
 0xa18   :  { %v416_v33 = vadd.f32 %v415_v32, %v414_v31 }
 0xa1a   :  { %604 = vrcp.f32 %v416_v33 }
 0xa20   :  { %v605_v34 = vpop.eup %604 }
 0xa21   :  { %v418_v35 = vmul.f32 0.125, %v605_v34 }
 0xa23   :  { %v419_v36 = vmul.f32 %v418_v35, %v748_v63 }
 0xa25   :  { %v420_v37 = vsel %vm126_vm2, %v419_v36, 0.0 }
 0xa26   :  { %421 = vadd.xlane.f32.xlu0 %v420_v37 }
 0xa99   :  { %v422_v38 = vpop.xlane.xlu0 %421 }
 0xa9a   :  { %606 = vrcp.f32 %v422_v38 }
 0xaa0   :  { %v607_v39 = vpop.eup %606 }
 0xaa1   :  { %v424_v40 = vmul.f32 0.125, %v607_v39 }
 0xaa3   :  { %v425_v41 = vmul.f32 %v424_v40, %v748_v63 }
 0xaa5   :  { %v426_v42 = vsel %vm126_vm2, %v425_v41, 0.0 }
 0xaa6   :  { %v427_v43 = vrot.slane %v426_v42, 4 }
 0xaa8   :  { %v428_v44 = vadd.f32 %v427_v43, %v426_v42 }
 0xaaa   :  { %v429_v45 = vrot.slane %v428_v44, 2 }
 0xaac   :  { %v430_v46 = vadd.f32 %v429_v45, %v428_v44 }
 0xaae   :  { %v431_v47 = vrot.slane %v430_v46, 1 }
 0xab0   :  { %v432_v48 = vadd.f32 %v431_v47, %v430_v46 }
 0xab2   :  { %608 = vrcp.f32 %v432_v48  ;;  %v444_v52 = vand.u32 2147483648, %v432_v48  ;;  %v442_v54 = vand.u32 2147483647, %v432_v48  ;;  %vm438_vm13 = vweird.f32 %v432_v48 }
 0xab4   :  { %v445_v56 = vor.u32 1.1754944e-38, %v444_v52  ;;  %vm443_vm15 = vcmp.eq.f32.partialorder %v442_v54, 8.507059e+37 }
 0xab8   :  { %v609_v49 = vpop.eup %608 }
 0xab9   :  { %v434_v50 = vmul.f32 %v609_v49, %v432_v48  ;;  %vm439_vm12 = vweird.f32 %v609_v49 }
 0xaba   :  { %vm440_vm14 = vmor %vm438_vm13, %vm439_vm12 }
 0xabb   :  { %v435_v51 = vsub.f32 1.0, %v434_v50 }
 0xabd   :  { %v436_v53 = vmul.f32 %v609_v49, %v435_v51 }
 0xabf   :  { %v437_v55 = vadd.f32 %v609_v49, %v436_v53 }
 0xac1   :  { %v441_v57 = vsel %vm440_vm14, %v609_v49, %v437_v55 }
 0xac2   :  { %v446_v59 = vsel %vm443_vm15, %v445_v56, %v441_v57 }
 0xac3   :  { %v447_v60 = vmul.f32 0.125, %v446_v59 }
 0xac5   :  { %v468_v61 = vmul.f32 %v467_v58, %v447_v60  ;;  %v448_v62 = vmul.f32 %v447_v60, %v748_v63 }
 0xac7   :  { %v469_v0 = vsel %vm126_vm2, %v468_v61, 0.0  ;;  %v449_v1 = vsel %vm126_vm2, %v448_v62, 0.0  ;;  %vm481_vm2 = vcmask 0  }
 0xac8   :  { %470 = vadd.xlane.f32.xlu2 %v469_v0  ;;  %450 = vadd.xlane.f32.xlu1 %v449_v1 }
 0xb3b   :  { %v451_v2 = vpop.xlane.xlu1 %450  ;;  %v471_v12 = vpop.xlane.xlu2 %470 }
 0xb3c   :  { %610 = vrcp.f32 %v451_v2  ;;  %v463_v6 = vand.u32 2147483648, %v451_v2  ;;  %v461_v28 = vand.u32 2147483647, %v451_v2  ;;  %vm457_vm1 = vweird.f32 %v451_v2 }
 0xb3e   :  { %v464_v63 = vor.u32 1.1754944e-38, %v463_v6  ;;  %vm462_vm4 = vcmp.eq.f32.partialorder %v461_v28, 8.507059e+37 }
 0xb42   :  { %v611_v3 = vpop.eup %610 }
 0xb43   :  { %v453_v4 = vmul.f32 %v611_v3, %v451_v2  ;;  %vm458_vm0 = vweird.f32 %v611_v3 }
 0xb44   :  { %vm459_vm3 = vmor %vm457_vm1, %vm458_vm0 }
 0xb45   :  { %v454_v5 = vsub.f32 1.0, %v453_v4 }
 0xb47   :  { %v455_v7 = vmul.f32 %v611_v3, %v454_v5 }
 0xb49   :  { %v456_v8 = vadd.f32 %v611_v3, %v455_v7 }
 0xb4b   :  { %v460_v9 = vsel %vm459_vm3, %v611_v3, %v456_v8 }
 0xb4c   :  { %v465_v10 = vsel %vm462_vm4, %v464_v63, %v460_v9 }
 0xb4d   :  { %v466_v11 = vmul.f32 0.125, %v465_v10 }
 0xb4f   :  { %v472_v13 = vmul.f32 %v471_v12, %v466_v11 }
 0xb51   :  { %v473_v14 = vrot.slane %v472_v13, 4 }
 0xb53   :  { %v474_v15 = vadd.f32 %v473_v14, %v472_v13 }
 0xb55   :  { %v475_v16 = vrot.slane %v474_v15, 2 }
 0xb57   :  { %v476_v17 = vadd.f32 %v475_v16, %v474_v15 }
 0xb59   :  { %v477_v18 = vrot.slane %v476_v17, 1 }
 0xb5b   :  { %v478_v20 = vadd.f32 %v477_v18, %v476_v17 }
 0xb5d   :  { %v480_v21 = vmul.f32 %v479_v19, %v478_v20 }
 0xb5f   :  { %482 = vst.msk [vmem:[#allocation8] sm:$0x1] %vm481_vm2, %v480_v21 }
 0xb60   :  { %493 = dma.vmem_to_hbm [thread:$0]  %s489_s30, 16, %s491_s6, [#allocation5]  }
 0xb61   :  { %696 = dma.done.wait [#allocation5], 16  }
 0xb62   :  { %697 = vsyncadd [#allocation5], 4294967280 }
 0xb63   :  { %498 = vsyncpa [#allocation4], 1 }
 0xb64   :  { %499 = vsyncpa [#allocation7], 1 }
 0xb65   :  { %500 = vsyncpa [#allocation5], 1 }

</bundles_post_ra>
